<compile_context>
chip_gen: v5e
topology: v5e:2x2
jax: 0.10.0
libtpu: 0.0.40
codegen_flags: <defaults>
</compile_context>

<pallas_src>
import jax
import jax.numpy as jnp
from jax.experimental import pallas as pl
from jax.experimental.pallas import tpu as pltpu


def _class_head_kernel(x_ref, w_ref, b_ref, o_ref):
    # x_ref: (1, C_in, t_hw)   NCHW slab, channel-major
    # w_ref: (C_out, C_in)     conv1x1 weight (squeezed)
    # b_ref: (C_out, 1)        bias, broadcast over pixels (lane dim)
    # o_ref: (1, C_out, t_hw)  lane-dense output block
    x = x_ref[0]                                   # (C_in, t_hw)
    acc = jnp.dot(w_ref[...], x, preferred_element_type=jnp.float32)
    acc = acc + b_ref[...].astype(jnp.float32)     # (C_out, t_hw)
    o_ref[0] = acc.astype(o_ref.dtype)


def _pick_hw_tile(hw, max_tile=4096):
    # Full-extent block when it fits (always layout-legal, one DMA per image);
    # otherwise a lane-dense multiple-of-128 tile; ragged tail handled by the
    # pl.cdiv grid + Pallas boundary masking.
    if hw <= max_tile:
        return hw
    return max_tile


def class_head_forward(x_nchw, weight, bias, num_anchors=3, max_hw_tile=4096):
    """x_nchw: (N, C_in, H, W); weight: (C_out, C_in); bias: (C_out,)."""
    N, C_in, H, W = x_nchw.shape
    C_out = weight.shape[0]
    assert C_out == num_anchors * 2

    HW = H * W
    t_hw = _pick_hw_tile(HW, max_hw_tile)

    # Free reshape (no HBM copy): NCHW is already contiguous as (N, C_in, H*W).
    x_flat = x_nchw.reshape(N, C_in, HW)
    b2 = bias.reshape(C_out, 1)

    out_cm = pl.pallas_call(
        _class_head_kernel,
        out_shape=jax.ShapeDtypeStruct((N, C_out, HW), x_nchw.dtype),
        grid_spec=pltpu.PrefetchScalarGridSpec(
            num_scalar_prefetch=0,
            grid=(N, pl.cdiv(HW, t_hw)),
            in_specs=[
                pl.BlockSpec((1, C_in, t_hw), lambda n, j: (n, 0, j)),
                pl.BlockSpec((C_out, C_in), lambda n, j: (0, 0)),
                pl.BlockSpec((C_out, 1), lambda n, j: (0, 0)),
            ],
            out_specs=pl.BlockSpec((1, C_out, t_hw), lambda n, j: (n, 0, j)),
        ),
        compiler_params=pltpu.CompilerParams(
            dimension_semantics=("parallel", "parallel")),
    )(x_flat, weight, b2)

    # Cheap glue on the 6-channel output: (N, C_out, HW) -> (N, HW, C_out)
    # -> (N, HW*num_anchors, 2), matching permute(0,2,3,1).view(N, -1, 2).
    out_nhwc = jnp.transpose(out_cm, (0, 2, 1))
    return out_nhwc.reshape(N, HW * num_anchors, 2)


def _reference(x_nchw, weight, bias, num_anchors=3):
    # Pure-JAX reference of the PyTorch forward.
    N, C_in, H, W = x_nchw.shape
    out = jnp.einsum("nchw,oc->nohw", x_nchw, weight) + bias[None, :, None, None]
    out = jnp.transpose(out, (0, 2, 3, 1))
    return out.reshape(N, -1, 2)


if __name__ == "__main__":
    num_anchors = 3
    C_out = num_anchors * 2

    key = jax.random.PRNGKey(0)
    kx, kw, kb, kx2 = jax.random.split(key, 4)

    # Case 1: small module-consistent shapes, single full-extent block per image.
    N, C_in, H, W = 2, 32, 16, 16
    x = jax.random.normal(kx, (N, C_in, H, W), dtype=jnp.float32)
    weight = jax.random.normal(kw, (C_out, C_in), dtype=jnp.float32) * 0.05
    bias = jax.random.normal(kb, (C_out,), dtype=jnp.float32) * 0.05

    out = class_head_forward(x, weight, bias, num_anchors=num_anchors)
    out = jax.block_until_ready(out)
    ref = _reference(x, weight, bias, num_anchors=num_anchors)
    assert out.shape == (N, H * W * num_anchors, 2), out.shape
    assert jnp.allclose(out, ref, atol=1e-4, rtol=1e-4), "mismatch vs reference (case 1)"

    # Case 2: exercise the tiled + ragged-tail path (HW=400 with 256-pixel tiles).
    H2, W2 = 20, 20
    x2 = jax.random.normal(kx2, (N, C_in, H2, W2), dtype=jnp.float32)
    out2 = class_head_forward(x2, weight, bias, num_anchors=num_anchors,
                              max_hw_tile=256)
    out2 = jax.block_until_ready(out2)
    ref2 = _reference(x2, weight, bias, num_anchors=num_anchors)
    assert out2.shape == (N, H2 * W2 * num_anchors, 2), out2.shape
    assert jnp.allclose(out2, ref2, atol=1e-4, rtol=1e-4), "mismatch vs reference (case 2)"

    print("KERNEL_OK")
</pallas_src>

<mosaic_0001>
module attributes {stable_mosaic.version = 11 : i64} {
  func.func @_class_head_kernel(%arg0: i32, %arg1: i32, %arg2: memref<1x32x256xf32, #tpu.memory_space<vmem>>, %arg3: memref<6x32xf32, #tpu.memory_space<vmem>>, %arg4: memref<6x1xf32, #tpu.memory_space<vmem>>, %arg5: memref<1x6x256xf32, #tpu.memory_space<vmem>>) attributes {dimension_semantics = [#tpu.dimension_semantics<parallel>, #tpu.dimension_semantics<parallel>], iteration_bounds = array<i64: 2, 1>, scalar_prefetch = 0 : i64, scratch_operands = 0 : i64, tpu.core_type = #tpu.core_type<tc>, window_params = [{transform_indices = @transform_0, window_bounds = array<i64: 1, 32, 256>}, {pipeline_mode = #tpu.pipeline_mode<synchronous>, transform_indices = @transform_1, window_bounds = array<i64: 6, 32>}, {pipeline_mode = #tpu.pipeline_mode<synchronous>, transform_indices = @transform_2, window_bounds = array<i64: 6, 1>}, {transform_indices = @transform_3, window_bounds = array<i64: 1, 6, 256>}]} {
    %c0 = arith.constant 0 : index
    %c0_0 = arith.constant 0 : index
    %c0_1 = arith.constant 0 : index
    %0 = vector.load %arg2[%c0, %c0_0, %c0_1] : memref<1x32x256xf32, #tpu.memory_space<vmem>>, vector<1x32x256xf32>
    %1 = vector.shape_cast %0 : vector<1x32x256xf32> to vector<32x256xf32>
    %c0_2 = arith.constant 0 : index
    %c0_3 = arith.constant 0 : index
    %2 = vector.load %arg3[%c0_2, %c0_3] : memref<6x32xf32, #tpu.memory_space<vmem>>, vector<6x32xf32>
    %cst = arith.constant dense<0.000000e+00> : vector<6x256xf32>
    %3 = tpu.matmul %2, %1, %cst {dimension_numbers = #tpu.dot_dimension_numbers<[1], [0], [0], [1], [0, 0, 1, 1], [], []>} : vector<6x32xf32>, vector<32x256xf32>, vector<6x256xf32> -> vector<6x256xf32>
    %c0_4 = arith.constant 0 : index
    %c0_5 = arith.constant 0 : index
    %4 = vector.load %arg4[%c0_4, %c0_5] : memref<6x1xf32, #tpu.memory_space<vmem>>, vector<6x1xf32>
    %5 = vector.broadcast %4 : vector<6x1xf32> to vector<6x256xf32>
    %6 = arith.addf %3, %5 : vector<6x256xf32>
    %c0_6 = arith.constant 0 : index
    %c0_7 = arith.constant 0 : index
    %c0_8 = arith.constant 0 : index
    %7 = vector.load %arg5[%c0_6, %c0_7, %c0_8] : memref<1x6x256xf32, #tpu.memory_space<vmem>>, vector<1x6x256xf32>
    %8 = vector.shape_cast %7 : vector<1x6x256xf32> to vector<6x256xf32>
    %9 = vector.shape_cast %6 : vector<6x256xf32> to vector<1x6x256xf32>
    tpu.vector_store %arg5[%c0_6, %c0_7, %c0_8], %9 {strides = array<i32>} : memref<1x6x256xf32, #tpu.memory_space<vmem>>, vector<1x6x256xf32>,
    return
  }
  func.func @transform_0(%arg0: i32, %arg1: i32) -> (i32, i32, i32) {
    %c0_i32 = arith.constant 0 : i32
    %c0_i32_0 = arith.constant 0 : i32
    return %arg0, %c0_i32, %arg1 : i32, i32, i32
  }
  func.func @transform_1(%arg0: i32, %arg1: i32) -> (i32, i32) {
    %c0_i32 = arith.constant 0 : i32
    %c0_i32_0 = arith.constant 0 : i32
    %c0_i32_1 = arith.constant 0 : i32
    return %c0_i32, %c0_i32_0 : i32, i32
  }
  func.func @transform_2(%arg0: i32, %arg1: i32) -> (i32, i32) {
    %c0_i32 = arith.constant 0 : i32
    %c0_i32_0 = arith.constant 0 : i32
    %c0_i32_1 = arith.constant 0 : i32
    return %c0_i32, %c0_i32_0 : i32, i32
  }
  func.func @transform_3(%arg0: i32, %arg1: i32) -> (i32, i32, i32) {
    %c0_i32 = arith.constant 0 : i32
    %c0_i32_0 = arith.constant 0 : i32
    return %arg0, %c0_i32, %arg1 : i32, i32, i32
  }
}

</mosaic_0001>

<bundles_post_ra>
// kernel: tpu_custom_call.1
= control target key start
LH: loop header
LB: loop body
LE: loop exit
PB: predicated region body
PF: predicated region fallthrough
CT: control target
= control target key end

     0   :  { %8 = vsyncpa [#allocation3], 0  ;;  %s652_s0 = inlined_call_operand.hbm [shape: f32[2,32,256], index: 0, kind: input, shape index: {}]   ;;  %s653_s1 = inlined_call_operand.vmem [shape: f32[6,32], index: 1, kind: input, shape index: {}]   ;;  %s654_s2 = inlined_call_operand.vmem [shape: f32[6,1], index: 2, kind: input, shape index: {}]   ;;  %s655_s3 = inlined_call_operand.vmem [shape: f32[2,6,256], index: 3, kind: output, shape index: {}]  }
   0x1   :  { %10 = vsyncpa [#allocation3 + $0x1], 0  ;;  %s558_s12 = smov 0   ;;  %s560_s13 = smov 0  }
   0x2   :  { %s562_s14 = smov 0   ;;  %s564_s15 = smov 0  }
   0x3   :  { %s566_s16 = smov 0   ;;  %s568_s17 = smov 0  }
   0x4 LB: > { %s377_s18 = sadd.s32 4294967295, %s533_s17   ;;  %s28_s19 = sadd.s32 1, %s529_s16  ;;  %s533_s17 = sphi %s568_s17, %s16_s17   ;;  %s529_s16 = sphi %s566_s16, %s662_s16   ;;  %s525_s15 = sphi %s564_s15, %s661_s15   ;;  %s521_s14 = sphi %s562_s14, %s660_s14   ;;  %s517_s13 = sphi %s560_s13, %s659_s13   ;;  %s513_s12 = sphi %s558_s12, %s658_s12  }
   0x5   : > { %p30_p0 = scmp.ge.s32.totalorder %s28_s19, 2  ;;  %s37_s20 = sadd.s32 1, %s521_s14 }
   0x6   : > { %p44_p1 = scmp.ne.s32.totalorder %s521_s14, %s517_s13  ;;  %p45_p2 = scmp.eq.s32.totalorder %s533_s17, 0 }
   0x7   : > { %s664_s19 = smov (%p30_p0, %s28_s19), 0  ;;  %p50_p4 = scmp.ne.s32.totalorder %s517_s13, %s513_s12 }
   0x8   : > { %p594_p3 = por %p45_p2, %p44_p1  ;;  %s32_s22 = ssub.s32 %s529_s16, %s664_s19 }
   0x9   : > { %p51_p5 = scmp.eq.s32.totalorder %s377_s18, 0  ;;  %p35_p6 = scmp.eq.s32.totalorder %s32_s22, 0 }
   0xa   : > { %p400_p8 = scmp.lt.s32.totalorder %s533_s17, 2  ;;  %s150_s25 = sand.u32 1, %s521_s14  }
   0xb   : > { %p601_p7 = por %p51_p5, %p50_p4  ;;  %s392_s26 = sshll.u32 %s529_s16, 6 }
   0xc   : > { %s607_s24 = scalar_select %p35_p6, %s521_s14, %s37_s20  }
   0xd   : > { %s381_s27 = sshll.u32 %s150_s25, 6  ;;  %s161_s30 = scalar_lea.hbm %s652_s0, %s392_s26 }
   0xe   : > { %s162_s4 = sshll.u32 %s161_s30, 4  ;;  %s154_s5 = scalar_lea.vmem [#allocation2], %s381_s27  ;;  %s163_s4 = int_to_ptr.hbm [resolvable:$true] %s162_s4 }
   0xf   : > { %s164_s6 = sshll.u32 %s154_s5, 4  ;;  %p397_p9 = pnand %p400_p8, %p594_p3  ;;  %s165_s6 = int_to_ptr.vmem [resolvable:$true] %s164_s6 }
  0x10   : > { %p384_p10 = scmp.ge.s32.totalorder %s533_s17, 1  ;;  %p172_p11 = scmp.lt.s32.totalorder %s533_s17, 3 }
  0x11   : > { %s151_s7 = scalar_lea.sflag [#allocation3], %s150_s25  ;;  %s535_s8 = smov 256  }
  0x12   : > { %s536_s9 = smov 16   ;;  %p173_p12 = pnand %p384_p10, %p172_p11 }
  0x13   : > { %399 = dma.hbm_to_vmem [thread:$0]  (!%p397_p9), %s163_s4, 1024, %s165_s6, %s151_s7, %s535_s8, %s535_s8, %s536_s9  }
  0x14   : > { %176 = sbr.rel (%p173_p12) target bundleno = 164 (0xa4), region = 32  ;;  %s178_s10 = sand.u32 (!%p173_p12), 1, %s517_s13  }
  0x15   : > { %s385_s11 = sshll.u32 (!%p173_p12), %s178_s10, 6  ;;  %s179_s12 = scalar_lea.sflag (!%p173_p12), [#allocation3], %s178_s10 }
  0x16   : > { %s182_s18 = scalar_lea.vmem (!%p173_p12), [#allocation2], %s385_s11 }
  0x19   : > { %508 = dma.done.wait (%p601_p7), %s179_s12, 1024  }
  0x1a   : > { %510 = vsyncadd (%p601_p7), %s179_s12, 4294966272  ;;  %v537_v0 = vmov 0   ;;  %v227_v1 = vld [vmem:[%s182_s18 + $0x30] sm:$0xff]  ;;  %v228_v2 = vld [vmem:[%s182_s18 + $0x38] sm:$0xff]  ;;  %vm236_vm0 = vcmask 261120   ;;  %p212_p13 = scmp.lt.s32.totalorder %s525_s15, 1 }
  0x1b   : > { %452 = vset.pattern.permute.xlu0 %v537_v0  ;;  %v225_v3 = vld [vmem:[%s182_s18 + $0x20] sm:$0xff]  ;;  %252 = vmatpush.msra.mxu0 %v227_v1  ;;  %v226_v4 = vld [vmem:[%s182_s18 + $0x28] sm:$0xff]  ;;  %v223_v5 = vld [vmem:[%s182_s18 + $0x10] sm:$0xff] }
  0x1c   : > { %272 = vmatpush.msra.mxu1 %v228_v2  ;;  %v224_v6 = vld [vmem:[%s182_s18 + $0x18] sm:$0xff]  ;;  %v230_v7 = vld [vmem:[%s654_s2] sm:$0x3f]  ;;  %v222_v9 = vld [vmem:[%s182_s18 + $0x8] sm:$0xff]  ;;  %s666_s15 = smov (!%p212_p13, %s525_s15), 1 }
  0x1d   : > { %253 = vmatpush.msra.mxu0 %v225_v3  ;;  %v221_v8 = vld [vmem:[%s182_s18] sm:$0xff]  ;;  %233 = vperm.xlu0 %452, %v230_v7   ;;  %s393_s25 = sshll.u32 %s666_s15, 4 }
  0x1e   : > { %273 = vmatpush.msra.mxu1 %v226_v4  ;;  %v229_v10 = vld [vmem:[%s653_s1] sm:$0x3f]  ;;  %s219_s28 = scalar_lea.vmem %s655_s3, %s393_s25 }
  0x1f   : > { %254 = vmatpush.msra.mxu0 %v223_v5 }
  0x20   : > { %274 = vmatpush.msra.mxu1 %v224_v6 }
  0x21   : > { %255 = vmatpush.msra.mxu0 %v221_v8 }
  0x22   : > { %275 = vmatpush.msra.mxu1 %v222_v9  ;;  %388 = vmatmul.msk.f32.vlgmr.msra.gmra.mxu0 %vm236_vm0, %v229_v10 }
  0x23   : > { %389 = vmatmul.msk.f32.vlgmr.msra.gmra.mxu1 %vm236_vm0, %v229_v10 }
  0x8f   : > { %v234_v11 = vpop.permute.xlu0 %233 }
  0x9f   : > { %v257_v12 = vpop.f32.mrf.mxu0 }
  0xa0   : > { %v277_v13 = vpop.f32.mrf.mxu1  ;;  %v258_v14 = vadd.f32 %v257_v12, %v234_v11 }
  0xa1   : > { %v278_v15 = vadd.f32 %v277_v13, %v234_v11 }
  0xa2   : > { %280 = vst [vmem:[%s219_s28] sm:$0x3f] %v258_v14 }
  0xa3   : > { %281 = vst [vmem:[%s219_s28 + $0x8] sm:$0x3f] %v278_v15 }
  0xa4 PF: > { %s16_s17 = sadd.s32 1, %s533_s17   ;;  %s658_s12 = smov %s517_s13 }
  0xa5   : > { %p13_p0 = scmp.ge.s32.totalorder %s16_s17, 4   ;;  %s659_s13 = smov %s521_s14 }
  0xa6   : > { %s660_s14 = smov %s607_s24  ;;  %s661_s15 = smov %s529_s16 }
  0xa7   : > { %s662_s16 = smov %s664_s19  ;;  %15 = sbr.rel (!%p13_p0) target bundleno = 4 (0x4), region = 72 }
  0xac   :  { %312 = vsyncpa [#allocation3], 1 }
  0xad   :  { %314 = vsyncpa [#allocation3 + $0x1], 1 }

</bundles_post_ra>
